<compile_context>
chip_gen: v7x
topology: tpu7x:2x2x1
jax: 0.10.0
libtpu: 0.0.40
codegen_flags: <defaults>
</compile_context>

<pallas_src>
import functools

import jax
import jax.numpy as jnp
from jax import lax
from jax.experimental import pallas as pl
from jax.experimental.pallas import tpu as pltpu

NUM_CLASSES = 3
EPS = 1e-10
LANE = 128


def _round_up(x, m):
    return -(-x // m) * m


def _sublane_req(dtype):
    # native sublane tiling: f32 -> 8, bf16 -> 16, int8/fp8 -> 32
    return {4: 8, 2: 16, 1: 32}.get(jnp.dtype(dtype).itemsize, 8)


def _vmem_capacity_bytes():
    try:
        return int(pltpu.get_tpu_info().vmem_capacity_bytes)
    except Exception:
        pass
    kind = ""
    try:
        kind = jax.devices()[0].device_kind.lower()
    except Exception:
        pass
    for tag in ("v4", "v5", "v6"):
        if tag in kind:
            return 128 * 1024 * 1024
    return 64 * 1024 * 1024  # v7x / unknown: conservative (64 MiB per TC)


def _seg_loss_kernel(pred_ref, targ_ref, dice_ref, wce_ref, *,
                     hw, tile_rows, split_tiles, needs_mask, assume_one_hot):
    s = pl.program_id(1)

    @pl.when(s == 0)
    def _init():
        dice_ref[...] = jnp.zeros(dice_ref.shape, jnp.float32)
        wce_ref[...] = jnp.zeros(wce_ref.shape, jnp.float32)

    p = pred_ref[...].astype(jnp.float32)          # (B, C, TR, L)
    t = targ_ref[...].astype(jnp.float32)
    B, C, TR, L = p.shape
    G = TR // 8                                    # f32 sublane groups per tile

    valid = None
    if needs_mask:
        # Element-level validity: masks (a) zero-padded pixels beyond HW and
        # (b) unspecified VMEM contents of ragged / fully-out-of-range tiles.
        tile = pl.program_id(0) * split_tiles + s          # un-clamped tile id
        row0 = tile * tile_rows
        rid = row0 + lax.broadcasted_iota(jnp.int32, (TR, L), 0)
        lid = lax.broadcasted_iota(jnp.int32, (TR, L), 1)
        valid = (rid * L + lid) < hw                       # (TR, L) bool
        vm = valid[None, None]
        p = jnp.where(vm, p, 0.0)
        t = jnp.where(vm, t, 0.0)

    pt = p * t

    # Sublane-partial reductions (pure VPU adds); the 8->1 sublane and lane
    # reductions are deferred to the tiny wrapper-side finalize.
    def bc_part(x):            # (B, C, TR, L) -> (B*C, 8, L)
        return jnp.sum(x.reshape(B, C, G, 8, L), axis=2).reshape(B * C, 8, L)

    def row_part(x):           # (B, TR, L) -> (8, L)
        return jnp.sum(x.reshape(B * G, 8, L), axis=0)

    dice_ref[0, 0] += bc_part(pt)     # sum(p*t) per (b, c)
    dice_ref[0, 1] += bc_part(p)      # sum(p)   per (b, c)
    dice_ref[0, 2] += bc_part(t)      # sum(t)   per (b, c)

    if assume_one_hot:
        # One log per pixel instead of C; class counts come from sum(t)
        # (already in the dice partials) in the wrapper finalize.
        lp = -jnp.log(jnp.sum(pt, axis=1) + EPS)           # (B, TR, L)
        for c in range(C):
            wce_ref[0, 0, c] += row_part(t[:, c] * lp)
    else:
        # Exact module semantics (soft targets allowed, torch.argmax ties).
        for c in range(C):
            wce_ref[0, 0, c] += row_part(-t[:, c] * jnp.log(p[:, c] + EPS))

        best = t[:, 0]                                     # first-max tie-break
        idx = jnp.zeros(best.shape, jnp.int32)
        for c in range(1, C):
            cur = t[:, c]
            better = cur > best
            best = jnp.where(better, cur, best)
            idx = jnp.where(better, jnp.int32(c), idx)
        for c in range(C):
            cm = idx == c
            if needs_mask:
                cm = jnp.logical_and(cm, valid[None])
            wce_ref[0, 1, c] += row_part(cm.astype(jnp.float32))


def segmentation_loss(predict, target, *, assume_one_hot=False, max_tile_rows=None):
    """predict, target: (B, C, H, W) arrays (NCHW, like the PyTorch module)."""
    B, C, H, W = predict.shape
    assert target.shape == predict.shape
    hw = H * W

    sublane_req = max(_sublane_req(predict.dtype), _sublane_req(target.dtype))
    itemsize = max(jnp.dtype(predict.dtype).itemsize, jnp.dtype(target.dtype).itemsize)

    # ---- lane-dense (rows, 128) layout; pad HW only when not fully aligned.
    quant = LANE * sublane_req
    hw_pad = _round_up(hw, quant)
    pflat = predict.reshape(B, C, hw)
    tflat = target.reshape(B, C, hw)
    if hw_pad != hw:
        pad = ((0, 0), (0, 0), (0, hw_pad - hw))
        pflat = jnp.pad(pflat, pad)
        tflat = jnp.pad(tflat, pad)
    rows = hw_pad // LANE                 # multiple of sublane_req by construction
    p4 = pflat.reshape(B, C, rows, LANE)
    t4 = tflat.reshape(B, C, rows, LANE)

    # ---- generation-aware tile sizing (per-input block budget & VMEM limit).
    vmem_cap = _vmem_capacity_bytes()
    block_budget = min(8 * 1024 * 1024, vmem_cap // 16)
    vmem_limit = int(min(vmem_cap * 0.6, 64 * 1024 * 1024))
    bytes_per_row = B * C * LANE * itemsize
    budget_rows = max(sublane_req,
                      (block_budget // bytes_per_row) // sublane_req * sublane_req)

    # Two-way split over row-tiles: the leading "parallel" axis feeds both
    # TensorCores on v7x; on single-core chips it is a cheap sequential loop.
    n_splits = 2 if rows >= 8 * sublane_req else 1
    rows_per_split = -(-rows // n_splits)
    pref_rows = _round_up(-(-rows_per_split // 4), sublane_req)   # ~4 tiles/split
    tile_rows = max(sublane_req,
                    min(budget_rows, pref_rows, _round_up(rows_per_split, sublane_req)))
    if max_tile_rows is not None:
        cap = max(sublane_req, (max_tile_rows // sublane_req) * sublane_req)
        tile_rows = min(tile_rows, cap)
    n_tiles = -(-rows // tile_rows)
    if n_tiles < n_splits:
        n_splits = 1
    split_tiles = -(-n_tiles // n_splits)
    needs_mask = (hw_pad != hw) or (n_splits * split_tiles * tile_rows != rows)

    in_block = (B, C, tile_rows, LANE)

    def in_idx(c, s):
        # Clamp so fully-out-of-range tiles (split overhang) re-read the last
        # valid block; their contributions are masked out inside the kernel.
        return (0, 0, jnp.minimum(c * split_tiles + s, n_tiles - 1), 0)

    kernel = functools.partial(
        _seg_loss_kernel, hw=hw, tile_rows=tile_rows, split_tiles=split_tiles,
        needs_mask=needs_mask, assume_one_hot=assume_one_hot)

    # NOTE: default pipeline depth (2) is kept; with 4-8 MiB blocks HBM is
    # typically saturated. Sweep pl.Buffered(3) if a trace shows exposed DMA.
    dice_part, wce_part = pl.pallas_call(
        kernel,
        out_shape=(jax.ShapeDtypeStruct((n_splits, 3, B * C, 8, LANE), jnp.float32),
                   jax.ShapeDtypeStruct((n_splits, 2, C, 8, LANE), jnp.float32)),
        grid_spec=pltpu.PrefetchScalarGridSpec(
            num_scalar_prefetch=0,
            grid=(n_splits, split_tiles),
            in_specs=[pl.BlockSpec(in_block, in_idx),
                      pl.BlockSpec(in_block, in_idx)],
            out_specs=(pl.BlockSpec((1, 3, B * C, 8, LANE),
                                    lambda c, s: (c, 0, 0, 0, 0)),
                       pl.BlockSpec((1, 2, C, 8, LANE),
                                    lambda c, s: (c, 0, 0, 0, 0)))),
        compiler_params=pltpu.CompilerParams(
            dimension_semantics=("parallel", "arbitrary"),
            vmem_limit_bytes=vmem_limit),
    )(p4, t4)

    # ---- tiny wrapper-side finalize (sublane/lane reduce + scalar loss math).
    d = jnp.sum(dice_part, axis=(0, 3, 4)).reshape(3, B, C)
    num, sp, st = d[0], d[1], d[2]
    per_bc = 1.0 - (2.0 * num + EPS) / (sp + st + EPS)
    dice_loss = jnp.mean(per_bc)                          # mean over batch, / C

    w = jnp.sum(wce_part, axis=(0, 3, 4))                 # (2, C)
    total_voxels = jnp.float32(B * H * W)
    ce = w[0] / total_voxels
    cnt = jnp.sum(st, axis=0) if assume_one_hot else w[1]
    weights = jnp.where(cnt > 0.0, jnp.log(total_voxels / (cnt + EPS)), 0.0)
    return jnp.sum(weights * ce) + dice_loss


def reference_loss(predict, target):
    """Pure-JAX reference mirroring the PyTorch module exactly."""
    B, C, H, W = predict.shape
    p = predict.reshape(B, C, -1)
    t = target.reshape(B, C, -1)
    dice = 0.0
    for i in range(C):
        num = jnp.sum(p[:, i] * t[:, i], axis=1)
        den = jnp.sum(p[:, i], axis=1) + jnp.sum(t[:, i], axis=1)
        dice = dice + jnp.mean(1.0 - (2.0 * num + EPS) / (den + EPS))
    dice = dice / C
    ce = jnp.mean(-t * jnp.log(p + EPS), axis=(0, 2))      # (C,)
    mask = jnp.argmax(t, axis=1)                           # (B, HW)
    total = mask.size
    ws = []
    for i in range(C):
        cnt = jnp.sum((mask == i).astype(jnp.float32))
        ws.append(jnp.where(cnt > 0.0, jnp.log(total / (cnt + EPS)), 0.0))
    wce = jnp.sum(jnp.stack(ws) * ce)
    return wce + dice


def _make_inputs(key, B, C, H, W):
    k1, k2 = jax.random.split(key)
    logits = jax.random.normal(k1, (B, C, H, W), dtype=jnp.float32)
    predict = jax.nn.softmax(logits, axis=1)               # softmax probs
    labels = jax.random.randint(k2, (B, H, W), 0, C)
    target = jnp.transpose(jax.nn.one_hot(labels, C, dtype=jnp.float32),
                           (0, 3, 1, 2))                   # (B, C, H, W)
    return predict, target


if __name__ == "__main__":
    key = jax.random.PRNGKey(0)
    C = NUM_CLASSES

    # 1) Small shape (HW padded to a full 8x128 tile; element-mask path).
    p1, t1 = _make_inputs(key, 2, C, 16, 16)
    loss1 = segmentation_loss(p1, t1)
    jax.block_until_ready(loss1)
    ref1 = reference_loss(p1, t1)
    assert jnp.allclose(loss1, ref1, rtol=1e-4, atol=1e-4), (loss1, ref1)

    # 2) Same inputs, fast one-hot path (one log/pixel, no argmax loop).
    loss1h = segmentation_loss(p1, t1, assume_one_hot=True)
    jax.block_until_ready(loss1h)
    assert jnp.allclose(loss1h, ref1, rtol=1e-4, atol=1e-4), (loss1h, ref1)

    # 3) Aligned shape, multi-step pipelined accumulation (no masking needed).
    p2, t2 = _make_inputs(key, 2, C, 64, 64)
    loss2 = segmentation_loss(p2, t2)
    jax.block_until_ready(loss2)
    ref2 = reference_loss(p2, t2)
    assert jnp.allclose(loss2, ref2, rtol=1e-4, atol=1e-4), (loss2, ref2)

    # 4) Two-way parallel split with ragged / fully-out-of-range tail tiles
    #    (exercises the clamped index_map + in-kernel row/lane mask).
    p3, t3 = _make_inputs(key, 2, C, 72, 128)
    loss3 = segmentation_loss(p3, t3)
    jax.block_until_ready(loss3)
    ref3 = reference_loss(p3, t3)
    assert jnp.allclose(loss3, ref3, rtol=1e-4, atol=1e-4), (loss3, ref3)

    print("KERNEL_OK")
</pallas_src>

<mosaic_0001>
module attributes {stable_mosaic.version = 11 : i64} {
  func.func @_seg_loss_kernel(%arg0: i32, %arg1: i32, %arg2: memref<2x3x8x128xf32, #tpu.memory_space<vmem>>, %arg3: memref<2x3x8x128xf32, #tpu.memory_space<vmem>>, %arg4: memref<1x3x6x8x128xf32, #tpu.memory_space<vmem>>, %arg5: memref<1x2x3x8x128xf32, #tpu.memory_space<vmem>>) attributes {dimension_semantics = [#tpu.dimension_semantics<parallel>, #tpu.dimension_semantics<arbitrary>], iteration_bounds = array<i64: 1, 1>, scalar_prefetch = 0 : i64, scratch_operands = 0 : i64, tpu.core_type = #tpu.core_type<tc>, window_params = [{transform_indices = @transform_0, window_bounds = array<i64: 2, 3, 8, 128>}, {transform_indices = @transform_1, window_bounds = array<i64: 2, 3, 8, 128>}, {transform_indices = @transform_2, window_bounds = array<i64: 1, 3, 6, 8, 128>}, {transform_indices = @transform_3, window_bounds = array<i64: 1, 2, 3, 8, 128>}]} {
    %c0_i32 = arith.constant 0 : i32
    %0 = arith.cmpi eq, %arg1, %c0_i32 : i32
    %1 = arith.extui %0 : i1 to i32
    %c0_i32_0 = arith.constant 0 : i32
    %2 = arith.cmpi ne, %1, %c0_i32_0 : i32
    scf.if %2 {
      %cst_117 = arith.constant 0.000000e+00 : f32
      %161 = vector.broadcast %cst_117 : f32 to vector<1x3x6x8x128xf32>
      %c0_118 = arith.constant 0 : index
      %c0_119 = arith.constant 0 : index
      %c0_120 = arith.constant 0 : index
      %c0_121 = arith.constant 0 : index
      %c0_122 = arith.constant 0 : index
      %162 = vector.load %arg4[%c0_118, %c0_119, %c0_120, %c0_121, %c0_122] : memref<1x3x6x8x128xf32, #tpu.memory_space<vmem>>, vector<1x3x6x8x128xf32>
      tpu.vector_store %arg4[%c0_118, %c0_119, %c0_120, %c0_121, %c0_122], %161 {strides = array<i32>} : memref<1x3x6x8x128xf32, #tpu.memory_space<vmem>>, vector<1x3x6x8x128xf32>,
      %cst_123 = arith.constant 0.000000e+00 : f32
      %163 = vector.broadcast %cst_123 : f32 to vector<1x2x3x8x128xf32>
      %c0_124 = arith.constant 0 : index
      %c0_125 = arith.constant 0 : index
      %c0_126 = arith.constant 0 : index
      %c0_127 = arith.constant 0 : index
      %c0_128 = arith.constant 0 : index
      %164 = vector.load %arg5[%c0_124, %c0_125, %c0_126, %c0_127, %c0_128] : memref<1x2x3x8x128xf32, #tpu.memory_space<vmem>>, vector<1x2x3x8x128xf32>
      tpu.vector_store %arg5[%c0_124, %c0_125, %c0_126, %c0_127, %c0_128], %163 {strides = array<i32>} : memref<1x2x3x8x128xf32, #tpu.memory_space<vmem>>, vector<1x2x3x8x128xf32>,
    } else {
    }
    %c0 = arith.constant 0 : index
    %c0_1 = arith.constant 0 : index
    %c0_2 = arith.constant 0 : index
    %c0_3 = arith.constant 0 : index
    %3 = vector.load %arg2[%c0, %c0_1, %c0_2, %c0_3] : memref<2x3x8x128xf32, #tpu.memory_space<vmem>>, vector<2x3x8x128xf32>
    %c0_4 = arith.constant 0 : index
    %c0_5 = arith.constant 0 : index
    %c0_6 = arith.constant 0 : index
    %c0_7 = arith.constant 0 : index
    %4 = vector.load %arg3[%c0_4, %c0_5, %c0_6, %c0_7] : memref<2x3x8x128xf32, #tpu.memory_space<vmem>>, vector<2x3x8x128xf32>
    %c1_i32 = arith.constant 1 : i32
    %5 = arith.muli %arg0, %c1_i32 : i32
    %6 = arith.addi %5, %arg1 : i32
    %c8_i32 = arith.constant 8 : i32
    %7 = arith.muli %6, %c8_i32 : i32
    %8 = tpu.iota {dimensions = array<i32: 0>} : vector<8x128xi32>
    %9 = vector.broadcast %7 : i32 to vector<8x128xi32>
    %10 = arith.addi %9, %8 : vector<8x128xi32>
    %11 = tpu.iota {dimensions = array<i32: 1>} : vector<8x128xi32>
    %c128_i32 = arith.constant 128 : i32
    %12 = vector.broadcast %c128_i32 : i32 to vector<8x128xi32>
    %13 = arith.muli %10, %12 : vector<8x128xi32>
    %14 = arith.addi %13, %11 : vector<8x128xi32>
    %c256_i32 = arith.constant 256 : i32
    %15 = vector.broadcast %c256_i32 : i32 to vector<8x128xi32>
    %16 = arith.cmpi slt, %14, %15 : vector<8x128xi32>
    %17 = vector.shape_cast %16 : vector<8x128xi1> to vector<1x1x8x128xi1>
    %cst = arith.constant 0.000000e+00 : f32
    %18 = vector.shape_cast %17 : vector<1x1x8x128xi1> to vector<1x1x8x128xi1>
    %19 = vector.broadcast %18 : vector<1x1x8x128xi1> to vector<2x3x8x128xi1>
    %20 = vector.broadcast %cst : f32 to vector<2x3x8x128xf32>
    %21 = arith.select %19, %3, %20 : vector<2x3x8x128xi1>, vector<2x3x8x128xf32>
    %cst_8 = arith.constant 0.000000e+00 : f32
    %22 = vector.shape_cast %17 : vector<1x1x8x128xi1> to vector<1x1x8x128xi1>
    %23 = vector.broadcast %22 : vector<1x1x8x128xi1> to vector<2x3x8x128xi1>
    %24 = vector.broadcast %cst_8 : f32 to vector<2x3x8x128xf32>
    %25 = arith.select %23, %4, %24 : vector<2x3x8x128xi1>, vector<2x3x8x128xf32>
    %26 = arith.mulf %21, %25 : vector<2x3x8x128xf32>
    %c0_9 = arith.constant 0 : index
    %c0_10 = arith.constant 0 : index
    %c0_11 = arith.constant 0 : index
    %c0_12 = arith.constant 0 : index
    %c0_13 = arith.constant 0 : index
    %27 = vector.load %arg4[%c0_9, %c0_10, %c0_11, %c0_12, %c0_13] : memref<1x3x6x8x128xf32, #tpu.memory_space<vmem>>, vector<1x1x6x8x128xf32>
    %28 = vector.shape_cast %27 : vector<1x1x6x8x128xf32> to vector<6x8x128xf32>
    %29 = vector.shape_cast %26 : vector<2x3x8x128xf32> to vector<2x3x1x8x128xf32>
    %cst_14 = arith.constant dense<0.000000e+00> : vector<2x3x8x128xf32>
    %30 = vector.multi_reduction <add>, %29, %cst_14 [2] : vector<2x3x1x8x128xf32> to vector<2x3x8x128xf32>
    %31 = vector.shape_cast %30 : vector<2x3x8x128xf32> to vector<6x8x128xf32>
    %32 = arith.addf %28, %31 : vector<6x8x128xf32>
    %c0_15 = arith.constant 0 : index
    %c0_16 = arith.constant 0 : index
    %c0_17 = arith.constant 0 : index
    %c0_18 = arith.constant 0 : index
    %c0_19 = arith.constant 0 : index
    %33 = vector.load %arg4[%c0_15, %c0_16, %c0_17, %c0_18, %c0_19] : memref<1x3x6x8x128xf32, #tpu.memory_space<vmem>>, vector<1x1x6x8x128xf32>
    %34 = vector.shape_cast %33 : vector<1x1x6x8x128xf32> to vector<6x8x128xf32>
    %35 = vector.shape_cast %32 : vector<6x8x128xf32> to vector<1x1x6x8x128xf32>
    tpu.vector_store %arg4[%c0_15, %c0_16, %c0_17, %c0_18, %c0_19], %35 {strides = array<i32>} : memref<1x3x6x8x128xf32, #tpu.memory_space<vmem>>, vector<1x1x6x8x128xf32>,
    %c0_20 = arith.constant 0 : index
    %c1 = arith.constant 1 : index
    %c0_21 = arith.constant 0 : index
    %c0_22 = arith.constant 0 : index
    %c0_23 = arith.constant 0 : index
    %36 = vector.load %arg4[%c0_20, %c1, %c0_21, %c0_22, %c0_23] : memref<1x3x6x8x128xf32, #tpu.memory_space<vmem>>, vector<1x1x6x8x128xf32>
    %37 = vector.shape_cast %36 : vector<1x1x6x8x128xf32> to vector<6x8x128xf32>
    %38 = vector.shape_cast %21 : vector<2x3x8x128xf32> to vector<2x3x1x8x128xf32>
    %cst_24 = arith.constant dense<0.000000e+00> : vector<2x3x8x128xf32>
    %39 = vector.multi_reduction <add>, %38, %cst_24 [2] : vector<2x3x1x8x128xf32> to vector<2x3x8x128xf32>
    %40 = vector.shape_cast %39 : vector<2x3x8x128xf32> to vector<6x8x128xf32>
    %41 = arith.addf %37, %40 : vector<6x8x128xf32>
    %c0_25 = arith.constant 0 : index
    %c1_26 = arith.constant 1 : index
    %c0_27 = arith.constant 0 : index
    %c0_28 = arith.constant 0 : index
    %c0_29 = arith.constant 0 : index
    %42 = vector.load %arg4[%c0_25, %c1_26, %c0_27, %c0_28, %c0_29] : memref<1x3x6x8x128xf32, #tpu.memory_space<vmem>>, vector<1x1x6x8x128xf32>
    %43 = vector.shape_cast %42 : vector<1x1x6x8x128xf32> to vector<6x8x128xf32>
    %44 = vector.shape_cast %41 : vector<6x8x128xf32> to vector<1x1x6x8x128xf32>
    tpu.vector_store %arg4[%c0_25, %c1_26, %c0_27, %c0_28, %c0_29], %44 {strides = array<i32>} : memref<1x3x6x8x128xf32, #tpu.memory_space<vmem>>, vector<1x1x6x8x128xf32>,
    %c0_30 = arith.constant 0 : index
    %c2 = arith.constant 2 : index
    %c0_31 = arith.constant 0 : index
    %c0_32 = arith.constant 0 : index
    %c0_33 = arith.constant 0 : index
    %45 = vector.load %arg4[%c0_30, %c2, %c0_31, %c0_32, %c0_33] : memref<1x3x6x8x128xf32, #tpu.memory_space<vmem>>, vector<1x1x6x8x128xf32>
    %46 = vector.shape_cast %45 : vector<1x1x6x8x128xf32> to vector<6x8x128xf32>
    %47 = vector.shape_cast %25 : vector<2x3x8x128xf32> to vector<2x3x1x8x128xf32>
    %cst_34 = arith.constant dense<0.000000e+00> : vector<2x3x8x128xf32>
    %48 = vector.multi_reduction <add>, %47, %cst_34 [2] : vector<2x3x1x8x128xf32> to vector<2x3x8x128xf32>
    %49 = vector.shape_cast %48 : vector<2x3x8x128xf32> to vector<6x8x128xf32>
    %50 = arith.addf %46, %49 : vector<6x8x128xf32>
    %c0_35 = arith.constant 0 : index
    %c2_36 = arith.constant 2 : index
    %c0_37 = arith.constant 0 : index
    %c0_38 = arith.constant 0 : index
    %c0_39 = arith.constant 0 : index
    %51 = vector.load %arg4[%c0_35, %c2_36, %c0_37, %c0_38, %c0_39] : memref<1x3x6x8x128xf32, #tpu.memory_space<vmem>>, vector<1x1x6x8x128xf32>
    %52 = vector.shape_cast %51 : vector<1x1x6x8x128xf32> to vector<6x8x128xf32>
    %53 = vector.shape_cast %50 : vector<6x8x128xf32> to vector<1x1x6x8x128xf32>
    tpu.vector_store %arg4[%c0_35, %c2_36, %c0_37, %c0_38, %c0_39], %53 {strides = array<i32>} : memref<1x3x6x8x128xf32, #tpu.memory_space<vmem>>, vector<1x1x6x8x128xf32>,
    %c0_40 = arith.constant 0 : index
    %c0_41 = arith.constant 0 : index
    %c0_42 = arith.constant 0 : index
    %c0_43 = arith.constant 0 : index
    %c0_44 = arith.constant 0 : index
    %54 = vector.load %arg5[%c0_40, %c0_41, %c0_42, %c0_43, %c0_44] : memref<1x2x3x8x128xf32, #tpu.memory_space<vmem>>, vector<1x1x1x8x128xf32>
    %55 = vector.shape_cast %54 : vector<1x1x1x8x128xf32> to vector<8x128xf32>
    %56 = vector.extract_strided_slice %25 {offsets = [0, 0, 0, 0], sizes = [2, 1, 8, 128], strides = [1, 1, 1, 1]} : vector<2x3x8x128xf32> to vector<2x1x8x128xf32>
    %57 = vector.shape_cast %56 : vector<2x1x8x128xf32> to vector<2x8x128xf32>
    %cst_45 = arith.constant 0.000000e+00 : f32
    %58 = vector.broadcast %cst_45 : f32 to vector<2x8x128xf32>
    %59 = arith.subf %58, %57 : vector<2x8x128xf32>
    %60 = vector.extract_strided_slice %21 {offsets = [0, 0, 0, 0], sizes = [2, 1, 8, 128], strides = [1, 1, 1, 1]} : vector<2x3x8x128xf32> to vector<2x1x8x128xf32>
    %61 = vector.shape_cast %60 : vector<2x1x8x128xf32> to vector<2x8x128xf32>
    %cst_46 = arith.constant 1.000000e-10 : f32
    %62 = vector.broadcast %cst_46 : f32 to vector<2x8x128xf32>
    %63 = arith.addf %61, %62 : vector<2x8x128xf32>
    %64 = math.log %63 : vector<2x8x128xf32>
    %65 = arith.mulf %59, %64 : vector<2x8x128xf32>
    %cst_47 = arith.constant dense<0.000000e+00> : vector<8x128xf32>
    %66 = vector.multi_reduction <add>, %65, %cst_47 [0] : vector<2x8x128xf32> to vector<8x128xf32>
    %67 = arith.addf %55, %66 : vector<8x128xf32>
    %c0_48 = arith.constant 0 : index
    %c0_49 = arith.constant 0 : index
    %c0_50 = arith.constant 0 : index
    %c0_51 = arith.constant 0 : index
    %c0_52 = arith.constant 0 : index
    %68 = vector.load %arg5[%c0_48, %c0_49, %c0_50, %c0_51, %c0_52] : memref<1x2x3x8x128xf32, #tpu.memory_space<vmem>>, vector<1x1x1x8x128xf32>
    %69 = vector.shape_cast %68 : vector<1x1x1x8x128xf32> to vector<8x128xf32>
    %70 = vector.shape_cast %67 : vector<8x128xf32> to vector<1x1x1x8x128xf32>
    tpu.vector_store %arg5[%c0_48, %c0_49, %c0_50, %c0_51, %c0_52], %70 {strides = array<i32>} : memref<1x2x3x8x128xf32, #tpu.memory_space<vmem>>, vector<1x1x1x8x128xf32>,
    %c0_53 = arith.constant 0 : index
    %c0_54 = arith.constant 0 : index
    %c1_55 = arith.constant 1 : index
    %c0_56 = arith.constant 0 : index
    %c0_57 = arith.constant 0 : index
    %71 = vector.load %arg5[%c0_53, %c0_54, %c1_55, %c0_56, %c0_57] : memref<1x2x3x8x128xf32, #tpu.memory_space<vmem>>, vector<1x1x1x8x128xf32>
    %72 = vector.shape_cast %71 : vector<1x1x1x8x128xf32> to vector<8x128xf32>
    %73 = vector.extract_strided_slice %25 {offsets = [0, 1, 0, 0], sizes = [2, 1, 8, 128], strides = [1, 1, 1, 1]} : vector<2x3x8x128xf32> to vector<2x1x8x128xf32>
    %74 = vector.shape_cast %73 : vector<2x1x8x128xf32> to vector<2x8x128xf32>
    %cst_58 = arith.constant 0.000000e+00 : f32
    %75 = vector.broadcast %cst_58 : f32 to vector<2x8x128xf32>
    %76 = arith.subf %75, %74 : vector<2x8x128xf32>
    %77 = vector.extract_strided_slice %21 {offsets = [0, 1, 0, 0], sizes = [2, 1, 8, 128], strides = [1, 1, 1, 1]} : vector<2x3x8x128xf32> to vector<2x1x8x128xf32>
    %78 = vector.shape_cast %77 : vector<2x1x8x128xf32> to vector<2x8x128xf32>
    %cst_59 = arith.constant 1.000000e-10 : f32
    %79 = vector.broadcast %cst_59 : f32 to vector<2x8x128xf32>
    %80 = arith.addf %78, %79 : vector<2x8x128xf32>
    %81 = math.log %80 : vector<2x8x128xf32>
    %82 = arith.mulf %76, %81 : vector<2x8x128xf32>
    %cst_60 = arith.constant dense<0.000000e+00> : vector<8x128xf32>
    %83 = vector.multi_reduction <add>, %82, %cst_60 [0] : vector<2x8x128xf32> to vector<8x128xf32>
    %84 = arith.addf %72, %83 : vector<8x128xf32>
    %c0_61 = arith.constant 0 : index
    %c0_62 = arith.constant 0 : index
    %c1_63 = arith.constant 1 : index
    %c0_64 = arith.constant 0 : index
    %c0_65 = arith.constant 0 : index
    %85 = vector.load %arg5[%c0_61, %c0_62, %c1_63, %c0_64, %c0_65] : memref<1x2x3x8x128xf32, #tpu.memory_space<vmem>>, vector<1x1x1x8x128xf32>
    %86 = vector.shape_cast %85 : vector<1x1x1x8x128xf32> to vector<8x128xf32>
    %87 = vector.shape_cast %84 : vector<8x128xf32> to vector<1x1x1x8x128xf32>
    tpu.vector_store %arg5[%c0_61, %c0_62, %c1_63, %c0_64, %c0_65], %87 {strides = array<i32>} : memref<1x2x3x8x128xf32, #tpu.memory_space<vmem>>, vector<1x1x1x8x128xf32>,
    %c0_66 = arith.constant 0 : index
    %c0_67 = arith.constant 0 : index
    %c2_68 = arith.constant 2 : index
    %c0_69 = arith.constant 0 : index
    %c0_70 = arith.constant 0 : index
    %88 = vector.load %arg5[%c0_66, %c0_67, %c2_68, %c0_69, %c0_70] : memref<1x2x3x8x128xf32, #tpu.memory_space<vmem>>, vector<1x1x1x8x128xf32>
    %89 = vector.shape_cast %88 : vector<1x1x1x8x128xf32> to vector<8x128xf32>
    %90 = vector.extract_strided_slice %25 {offsets = [0, 2, 0, 0], sizes = [2, 1, 8, 128], strides = [1, 1, 1, 1]} : vector<2x3x8x128xf32> to vector<2x1x8x128xf32>
    %91 = vector.shape_cast %90 : vector<2x1x8x128xf32> to vector<2x8x128xf32>
    %cst_71 = arith.constant 0.000000e+00 : f32
    %92 = vector.broadcast %cst_71 : f32 to vector<2x8x128xf32>
    %93 = arith.subf %92, %91 : vector<2x8x128xf32>
    %94 = vector.extract_strided_slice %21 {offsets = [0, 2, 0, 0], sizes = [2, 1, 8, 128], strides = [1, 1, 1, 1]} : vector<2x3x8x128xf32> to vector<2x1x8x128xf32>
    %95 = vector.shape_cast %94 : vector<2x1x8x128xf32> to vector<2x8x128xf32>
    %cst_72 = arith.constant 1.000000e-10 : f32
    %96 = vector.broadcast %cst_72 : f32 to vector<2x8x128xf32>
    %97 = arith.addf %95, %96 : vector<2x8x128xf32>
    %98 = math.log %97 : vector<2x8x128xf32>
    %99 = arith.mulf %93, %98 : vector<2x8x128xf32>
    %cst_73 = arith.constant dense<0.000000e+00> : vector<8x128xf32>
    %100 = vector.multi_reduction <add>, %99, %cst_73 [0] : vector<2x8x128xf32> to vector<8x128xf32>
    %101 = arith.addf %89, %100 : vector<8x128xf32>
    %c0_74 = arith.constant 0 : index
    %c0_75 = arith.constant 0 : index
    %c2_76 = arith.constant 2 : index
    %c0_77 = arith.constant 0 : index
    %c0_78 = arith.constant 0 : index
    %102 = vector.load %arg5[%c0_74, %c0_75, %c2_76, %c0_77, %c0_78] : memref<1x2x3x8x128xf32, #tpu.memory_space<vmem>>, vector<1x1x1x8x128xf32>
    %103 = vector.shape_cast %102 : vector<1x1x1x8x128xf32> to vector<8x128xf32>
    %104 = vector.shape_cast %101 : vector<8x128xf32> to vector<1x1x1x8x128xf32>
    tpu.vector_store %arg5[%c0_74, %c0_75, %c2_76, %c0_77, %c0_78], %104 {strides = array<i32>} : memref<1x2x3x8x128xf32, #tpu.memory_space<vmem>>, vector<1x1x1x8x128xf32>,
    %105 = vector.extract_strided_slice %25 {offsets = [0, 0, 0, 0], sizes = [2, 1, 8, 128], strides = [1, 1, 1, 1]} : vector<2x3x8x128xf32> to vector<2x1x8x128xf32>
    %106 = vector.shape_cast %105 : vector<2x1x8x128xf32> to vector<2x8x128xf32>
    %c0_i32_79 = arith.constant 0 : i32
    %107 = vector.broadcast %c0_i32_79 : i32 to vector<2x8x128xi32>
    %108 = vector.extract_strided_slice %25 {offsets = [0, 1, 0, 0], sizes = [2, 1, 8, 128], strides = [1, 1, 1, 1]} : vector<2x3x8x128xf32> to vector<2x1x8x128xf32>
    %109 = vector.shape_cast %108 : vector<2x1x8x128xf32> to vector<2x8x128xf32>
    %110 = arith.cmpf ogt, %109, %106 : vector<2x8x128xf32>
    %111 = arith.select %110, %109, %106 : vector<2x8x128xi1>, vector<2x8x128xf32>
    %c1_i32_80 = arith.constant 1 : i32
    %112 = vector.broadcast %c1_i32_80 : i32 to vector<2x8x128xi32>
    %113 = arith.select %110, %112, %107 : vector<2x8x128xi1>, vector<2x8x128xi32>
    %114 = vector.extract_strided_slice %25 {offsets = [0, 2, 0, 0], sizes = [2, 1, 8, 128], strides = [1, 1, 1, 1]} : vector<2x3x8x128xf32> to vector<2x1x8x128xf32>
    %115 = vector.shape_cast %114 : vector<2x1x8x128xf32> to vector<2x8x128xf32>
    %116 = arith.cmpf ogt, %115, %111 : vector<2x8x128xf32>
    %c2_i32 = arith.constant 2 : i32
    %117 = vector.broadcast %c2_i32 : i32 to vector<2x8x128xi32>
    %118 = arith.select %116, %117, %113 : vector<2x8x128xi1>, vector<2x8x128xi32>
    %c0_i32_81 = arith.constant 0 : i32
    %119 = vector.broadcast %c0_i32_81 : i32 to vector<2x8x128xi32>
    %120 = arith.cmpi eq, %118, %119 : vector<2x8x128xi32>
    %121 = vector.shape_cast %16 : vector<8x128xi1> to vector<1x8x128xi1>
    %122 = vector.broadcast %121 : vector<1x8x128xi1> to vector<2x8x128xi1>
    %123 = arith.andi %120, %122 : vector<2x8x128xi1>
    %c0_82 = arith.constant 0 : index
    %c1_83 = arith.constant 1 : index
    %c0_84 = arith.constant 0 : index
    %c0_85 = arith.constant 0 : index
    %c0_86 = arith.constant 0 : index
    %124 = vector.load %arg5[%c0_82, %c1_83, %c0_84, %c0_85, %c0_86] : memref<1x2x3x8x128xf32, #tpu.memory_space<vmem>>, vector<1x1x1x8x128xf32>
    %125 = vector.shape_cast %124 : vector<1x1x1x8x128xf32> to vector<8x128xf32>
    %126 = arith.extui %123 : vector<2x8x128xi1> to vector<2x8x128xi32>
    %127 = arith.sitofp %126 : vector<2x8x128xi32> to vector<2x8x128xf32>
    %cst_87 = arith.constant dense<0.000000e+00> : vector<8x128xf32>
    %128 = vector.multi_reduction <add>, %127, %cst_87 [0] : vector<2x8x128xf32> to vector<8x128xf32>
    %129 = arith.addf %125, %128 : vector<8x128xf32>
    %c0_88 = arith.constant 0 : index
    %c1_89 = arith.constant 1 : index
    %c0_90 = arith.constant 0 : index
    %c0_91 = arith.constant 0 : index
    %c0_92 = arith.constant 0 : index
    %130 = vector.load %arg5[%c0_88, %c1_89, %c0_90, %c0_91, %c0_92] : memref<1x2x3x8x128xf32, #tpu.memory_space<vmem>>, vector<1x1x1x8x128xf32>
    %131 = vector.shape_cast %130 : vector<1x1x1x8x128xf32> to vector<8x128xf32>
    %132 = vector.shape_cast %129 : vector<8x128xf32> to vector<1x1x1x8x128xf32>
    tpu.vector_store %arg5[%c0_88, %c1_89, %c0_90, %c0_91, %c0_92], %132 {strides = array<i32>} : memref<1x2x3x8x128xf32, #tpu.memory_space<vmem>>, vector<1x1x1x8x128xf32>,
    %c1_i32_93 = arith.constant 1 : i32
    %133 = vector.broadcast %c1_i32_93 : i32 to vector<2x8x128xi32>
    %134 = arith.cmpi eq, %118, %133 : vector<2x8x128xi32>
    %135 = vector.shape_cast %16 : vector<8x128xi1> to vector<1x8x128xi1>
    %136 = vector.broadcast %135 : vector<1x8x128xi1> to vector<2x8x128xi1>
    %137 = arith.andi %134, %136 : vector<2x8x128xi1>
    %c0_94 = arith.constant 0 : index
    %c1_95 = arith.constant 1 : index
    %c1_96 = arith.constant 1 : index
    %c0_97 = arith.constant 0 : index
    %c0_98 = arith.constant 0 : index
    %138 = vector.load %arg5[%c0_94, %c1_95, %c1_96, %c0_97, %c0_98] : memref<1x2x3x8x128xf32, #tpu.memory_space<vmem>>, vector<1x1x1x8x128xf32>
    %139 = vector.shape_cast %138 : vector<1x1x1x8x128xf32> to vector<8x128xf32>
    %140 = arith.extui %137 : vector<2x8x128xi1> to vector<2x8x128xi32>
    %141 = arith.sitofp %140 : vector<2x8x128xi32> to vector<2x8x128xf32>
    %cst_99 = arith.constant dense<0.000000e+00> : vector<8x128xf32>
    %142 = vector.multi_reduction <add>, %141, %cst_99 [0] : vector<2x8x128xf32> to vector<8x128xf32>
    %143 = arith.addf %139, %142 : vector<8x128xf32>
    %c0_100 = arith.constant 0 : index
    %c1_101 = arith.constant 1 : index
    %c1_102 = arith.constant 1 : index
    %c0_103 = arith.constant 0 : index
    %c0_104 = arith.constant 0 : index
    %144 = vector.load %arg5[%c0_100, %c1_101, %c1_102, %c0_103, %c0_104] : memref<1x2x3x8x128xf32, #tpu.memory_space<vmem>>, vector<1x1x1x8x128xf32>
    %145 = vector.shape_cast %144 : vector<1x1x1x8x128xf32> to vector<8x128xf32>
    %146 = vector.shape_cast %143 : vector<8x128xf32> to vector<1x1x1x8x128xf32>
    tpu.vector_store %arg5[%c0_100, %c1_101, %c1_102, %c0_103, %c0_104], %146 {strides = array<i32>} : memref<1x2x3x8x128xf32, #tpu.memory_space<vmem>>, vector<1x1x1x8x128xf32>,
    %c2_i32_105 = arith.constant 2 : i32
    %147 = vector.broadcast %c2_i32_105 : i32 to vector<2x8x128xi32>
    %148 = arith.cmpi eq, %118, %147 : vector<2x8x128xi32>
    %149 = vector.shape_cast %16 : vector<8x128xi1> to vector<1x8x128xi1>
    %150 = vector.broadcast %149 : vector<1x8x128xi1> to vector<2x8x128xi1>
    %151 = arith.andi %148, %150 : vector<2x8x128xi1>
    %c0_106 = arith.constant 0 : index
    %c1_107 = arith.constant 1 : index
    %c2_108 = arith.constant 2 : index
    %c0_109 = arith.constant 0 : index
    %c0_110 = arith.constant 0 : index
    %152 = vector.load %arg5[%c0_106, %c1_107, %c2_108, %c0_109, %c0_110] : memref<1x2x3x8x128xf32, #tpu.memory_space<vmem>>, vector<1x1x1x8x128xf32>
    %153 = vector.shape_cast %152 : vector<1x1x1x8x128xf32> to vector<8x128xf32>
    %154 = arith.extui %151 : vector<2x8x128xi1> to vector<2x8x128xi32>
    %155 = arith.sitofp %154 : vector<2x8x128xi32> to vector<2x8x128xf32>
    %cst_111 = arith.constant dense<0.000000e+00> : vector<8x128xf32>
    %156 = vector.multi_reduction <add>, %155, %cst_111 [0] : vector<2x8x128xf32> to vector<8x128xf32>
    %157 = arith.addf %153, %156 : vector<8x128xf32>
    %c0_112 = arith.constant 0 : index
    %c1_113 = arith.constant 1 : index
    %c2_114 = arith.constant 2 : index
    %c0_115 = arith.constant 0 : index
    %c0_116 = arith.constant 0 : index
    %158 = vector.load %arg5[%c0_112, %c1_113, %c2_114, %c0_115, %c0_116] : memref<1x2x3x8x128xf32, #tpu.memory_space<vmem>>, vector<1x1x1x8x128xf32>
    %159 = vector.shape_cast %158 : vector<1x1x1x8x128xf32> to vector<8x128xf32>
    %160 = vector.shape_cast %157 : vector<8x128xf32> to vector<1x1x1x8x128xf32>
    tpu.vector_store %arg5[%c0_112, %c1_113, %c2_114, %c0_115, %c0_116], %160 {strides = array<i32>} : memref<1x2x3x8x128xf32, #tpu.memory_space<vmem>>, vector<1x1x1x8x128xf32>,
    return
  }
  func.func @transform_0(%arg0: i32, %arg1: i32) -> (i32, i32, i32, i32) {
    %c1_i32 = arith.constant 1 : i32
    %0 = arith.muli %arg0, %c1_i32 : i32
    %1 = arith.addi %0, %arg1 : i32
    %c0_i32 = arith.constant 0 : i32
    %2 = arith.minsi %1, %c0_i32 : i32
    %c0_i32_0 = arith.constant 0 : i32
    %c0_i32_1 = arith.constant 0 : i32
    %c0_i32_2 = arith.constant 0 : i32
    %c0_i32_3 = arith.constant 0 : i32
    return %c0_i32_0, %c0_i32_1, %2, %c0_i32_2 : i32, i32, i32, i32
  }
  func.func @transform_1(%arg0: i32, %arg1: i32) -> (i32, i32, i32, i32) {
    %c1_i32 = arith.constant 1 : i32
    %0 = arith.muli %arg0, %c1_i32 : i32
    %1 = arith.addi %0, %arg1 : i32
    %c0_i32 = arith.constant 0 : i32
    %2 = arith.minsi %1, %c0_i32 : i32
    %c0_i32_0 = arith.constant 0 : i32
    %c0_i32_1 = arith.constant 0 : i32
    %c0_i32_2 = arith.constant 0 : i32
    %c0_i32_3 = arith.constant 0 : i32
    return %c0_i32_0, %c0_i32_1, %2, %c0_i32_2 : i32, i32, i32, i32
  }
  func.func @transform_2(%arg0: i32, %arg1: i32) -> (i32, i32, i32, i32, i32) {
    %c0_i32 = arith.constant 0 : i32
    %c0_i32_0 = arith.constant 0 : i32
    %c0_i32_1 = arith.constant 0 : i32
    %c0_i32_2 = arith.constant 0 : i32
    %c0_i32_3 = arith.constant 0 : i32
    return %arg0, %c0_i32, %c0_i32_0, %c0_i32_1, %c0_i32_2 : i32, i32, i32, i32, i32
  }
  func.func @transform_3(%arg0: i32, %arg1: i32) -> (i32, i32, i32, i32, i32) {
    %c0_i32 = arith.constant 0 : i32
    %c0_i32_0 = arith.constant 0 : i32
    %c0_i32_1 = arith.constant 0 : i32
    %c0_i32_2 = arith.constant 0 : i32
    %c0_i32_3 = arith.constant 0 : i32
    return %arg0, %c0_i32, %c0_i32_0, %c0_i32_1, %c0_i32_2 : i32, i32, i32, i32, i32
  }
}

</mosaic_0001>

<bundles_post_ra>
// kernel: tpu_custom_call.1
= control target key start
LH: loop header
LB: loop body
LE: loop exit
PB: predicated region body
PF: predicated region fallthrough
CT: control target
= control target key end

     0   :  { %9 = vsyncpa [#allocation3], 0  ;;  %s638_s0 = inlined_call_operand.hbm [shape: f32[2,3,8,128], index: 0, kind: input, shape index: {}]   ;;  %s639_s1 = inlined_call_operand.hbm [shape: f32[2,3,8,128], index: 1, kind: input, shape index: {}]   ;;  %s640_s2 = inlined_call_operand.hbm [shape: f32[1,3,6,8,128], index: 2, kind: output, shape index: {0}]   ;;  %s641_s3 = inlined_call_operand.hbm [shape: f32[1,2,3,8,128], index: 3, kind: output, shape index: {1}]  }
   0x1   :  { %10 = vsyncpa [#allocation6], 0 }
   0x2   :  { %11 = vsyncpa [#allocation4], 0 }
   0x3   :  { %12 = vsyncpa [#allocation9], 0  ;;  %s457_s12 = smov [#allocation2]   ;;  %s361_s16 = scalar_lea.hbm %s638_s0, 768 }
   0x4   :  { %s23_s13 = sshll.u32 %s457_s12, 4  ;;  %p362_p0 = scmp.ne.s32.totalorder %s638_s0, %s361_s16  ;;  %s24_s13 = int_to_ptr.vmem [resolvable:$true] %s23_s13 }
   0x5   :  { %p365_p1 = scmp.lt.u32.totalorder %s361_s16, %s638_s0 }
   0x7   :  { %p367_p2 = pnand %p365_p1, %p362_p0 }
   0x9   :  { %370 = shalt.err (!%p367_p2)
}
   0xa   :  { %s371_s21 = scalar_lea.vmem %s24_s13, 768  ;;  %p376_p4 = scmp.lt.s32.totalorder %s24_s13, %s24_s13 }
   0xb   :  { %p372_p3 = scmp.ne.s32.totalorder %s24_s13, %s371_s21  ;;  %p377_p5 = scmp.lt.s32.totalorder %s371_s21, %s371_s21 }
   0xd   :  { %p378_p6 = por %p377_p5, %p376_p4 }
   0xf   :  { %p379_p7 = pnand %p378_p6, %p372_p3 }
  0x11   :  { %382 = shalt.err (!%p379_p7)
}
  0x12   :  { %s458_s22 = smov 128   ;;  %s459_s23 = smov 8  }
  0x13   :  { %29 = dma.hbm_to_vmem [thread:$0]  %s638_s0, 768, %s24_s13, [#allocation3], %s458_s22, %s458_s22, %s459_s23  }
  0x14   :  { %s460_s26 = smov [#allocation5]   ;;  %s383_s30 = scalar_lea.hbm %s639_s1, 768 }
  0x15   :  { %s40_s27 = sshll.u32 %s460_s26, 4  ;;  %p384_p8 = scmp.ne.s32.totalorder %s639_s1, %s383_s30  ;;  %s41_s27 = int_to_ptr.vmem [resolvable:$true] %s40_s27 }
  0x16   :  { %p387_p9 = scmp.lt.u32.totalorder %s383_s30, %s639_s1 }
  0x18   :  { %p389_p10 = pnand %p387_p9, %p384_p8 }
  0x1a   :  { %392 = shalt.err (!%p389_p10)
}
  0x1b   :  { %s393_s8 = scalar_lea.vmem %s41_s27, 768  ;;  %p398_p12 = scmp.lt.s32.totalorder %s41_s27, %s41_s27 }
  0x1c   :  { %p394_p11 = scmp.ne.s32.totalorder %s41_s27, %s393_s8  ;;  %p399_p13 = scmp.lt.s32.totalorder %s393_s8, %s393_s8 }
  0x1e   :  { %p400_p0 = por %p399_p13, %p398_p12 }
  0x20   :  { %p401_p1 = pnand %p400_p0, %p394_p11 }
  0x22   :  { %404 = shalt.err (!%p401_p1)
}
  0x23   :  { %46 = dma.hbm_to_vmem [thread:$0]  %s639_s1, 768, %s41_s27, [#allocation6], %s458_s22, %s458_s22, %s459_s23  }
  0x24   :  { %449 = dma.done.wait [#allocation3], 768  }
  0x25   :  { %450 = vsyncadd [#allocation3], 4294966528 }
  0x26   :  { %451 = dma.done.wait [#allocation6], 768  }
  0x27   :  { %452 = vsyncadd [#allocation6], 4294966528  ;;  %v101_v0 = vlaneseq  ;;  %v87_v5 = vld [vmem:[#allocation2] sm:$0xff]  ;;  %v93_v6 = vld [vmem:[#allocation5] sm:$0xff]  ;;  %s461_s1 = smov [#allocation7]   ;;  %v462_v50 = vmov 0  }
  0x28   :  { %v88_v7 = vld [vmem:[#allocation2 + $0x8] sm:$0xff]  ;;  %v94_v8 = vld [vmem:[#allocation5 + $0x8] sm:$0xff]  ;;  %v89_v9 = vld [vmem:[#allocation2 + $0x10] sm:$0xff]  ;;  %s302_s10 = sshll.u32 %s461_s1, 4  ;;  %s560_s10 = int_to_ptr.vmem [resolvable:$true] %s302_s10 }
  0x29   :  { %v102_v1 = vshrl.u32 %v101_v0, 7  ;;  %v106_v2 = vand.u32 127, %v101_v0  ;;  %v95_v10 = vld [vmem:[#allocation5 + $0x10] sm:$0xff]  ;;  %v90_v15 = vld [vmem:[#allocation2 + $0x18] sm:$0xff]  ;;  %v96_v16 = vld [vmem:[#allocation5 + $0x18] sm:$0xff]  ;;  %s405_s11 = scalar_lea.vmem %s560_s10, 2304  ;;  %p410_p3 = scmp.lt.s32.totalorder %s560_s10, %s560_s10 }
  0x2a   :  { %v91_v21 = vld [vmem:[#allocation2 + $0x20] sm:$0xff]  ;;  %v97_v26 = vld [vmem:[#allocation5 + $0x20] sm:$0xff]  ;;  %v92_v27 = vld [vmem:[#allocation2 + $0x28] sm:$0xff]  ;;  %p406_p2 = scmp.ne.s32.totalorder %s560_s10, %s405_s11  ;;  %p411_p4 = scmp.lt.s32.totalorder %s405_s11, %s405_s11 }
  0x2b   :  { %v107_v3 = vmul.u32 128, %v102_v1  ;;  %v98_v32 = vld [vmem:[#allocation5 + $0x28] sm:$0xff] }
  0x2c   :  { %p412_p5 = por %p411_p4, %p410_p3 }
  0x2d   :  { %v515_v4 = vadd.s32 %v107_v3, %v106_v2 }
  0x2e   :  { %p413_p6 = pnand %p412_p5, %p406_p2 }
  0x2f   :  { %vm109_vm0 = vcmp.lt.s32.totalorder %v515_v4, 256 }
  0x30   :  { %v112_v11 = vsel %vm109_vm0, %v87_v5, 0.0  ;;  %v522_v12 = vsel %vm109_vm0, %v93_v6, 0.0  ;;  %v113_v13 = vsel %vm109_vm0, %v88_v7, 0.0  ;;  %v528_v14 = vsel %vm109_vm0, %v94_v8, 0.0 }
  0x31   :  { %v124_v17 = vmul.f32 %v522_v12, %v112_v11  ;;  %v207_v18 = vadd.f32 1e-10, %v112_v11  ;;  %v125_v19 = vmul.f32 %v528_v14, %v113_v13  ;;  %v222_v20 = vadd.f32 1e-10, %v113_v13  ;;  %173 = vst [vmem:[#allocation7 + $0x30] sm:$0xff] %v112_v11  ;;  %174 = vst [vmem:[#allocation7 + $0x38] sm:$0xff] %v113_v13 }
  0x32   :  { %v114_v22 = vsel %vm109_vm0, %v89_v9, 0.0  ;;  %v536_v23 = vsel %vm109_vm0, %v95_v10, 0.0  ;;  %v115_v24 = vsel %vm109_vm0, %v90_v15, 0.0  ;;  %v542_v25 = vsel %vm109_vm0, %v96_v16, 0.0  ;;  %198 = vst [vmem:[#allocation7 + $0x60] sm:$0xff] %v522_v12  ;;  %199 = vst [vmem:[#allocation7 + $0x68] sm:$0xff] %v528_v14 }
  0x33   :  { %349 = vlog2.f32 %v207_v18  ;;  %v126_v28 = vmul.f32 %v536_v23, %v114_v22  ;;  %v237_v29 = vadd.f32 1e-10, %v114_v22  ;;  %v127_v30 = vmul.f32 %v542_v25, %v115_v24  ;;  %148 = vst [vmem:[#allocation7] sm:$0xff] %v124_v17  ;;  %149 = vst [vmem:[#allocation7 + $0x8] sm:$0xff] %v125_v19 }
  0x34   :  { %351 = vlog2.f32 %v222_v20  ;;  %v208_v31 = vadd.f32 1e-10, %v115_v24  ;;  %v116_v33 = vsel %vm109_vm0, %v91_v21, 0.0  ;;  %v550_v34 = vsel %vm109_vm0, %v97_v26, 0.0  ;;  %175 = vst [vmem:[#allocation7 + $0x40] sm:$0xff] %v114_v22  ;;  %176 = vst [vmem:[#allocation7 + $0x48] sm:$0xff] %v115_v24 }
  0x35   :  { %v117_v35 = vsel %vm109_vm0, %v92_v27, 0.0  ;;  %353 = vlog2.f32 %v237_v29  ;;  %v128_v36 = vmul.f32 %v550_v34, %v116_v33  ;;  %v223_v37 = vadd.f32 1e-10, %v116_v33  ;;  %150 = vst [vmem:[#allocation7 + $0x10] sm:$0xff] %v126_v28  ;;  %151 = vst [vmem:[#allocation7 + $0x18] sm:$0xff] %v127_v30 }
  0x36   :  { %355 = vlog2.f32 %v208_v31  ;;  %v557_v38 = vsel %vm109_vm0, %v98_v32, 0.0  ;;  %v238_v39 = vadd.f32 1e-10, %v117_v35  ;;  %177 = vst [vmem:[#allocation7 + $0x50] sm:$0xff] %v116_v33  ;;  %178 = vst [vmem:[#allocation7 + $0x58] sm:$0xff] %v117_v35  ;;  %v205_v41 = vsub.f32 0.0, %v522_v12 }
  0x37   :  { %357 = vlog2.f32 %v223_v37  ;;  %v129_v40 = vmul.f32 %v557_v38, %v117_v35  ;;  %152 = vst [vmem:[#allocation7 + $0x20] sm:$0xff] %v128_v36  ;;  %v206_v42 = vsub.f32 0.0, %v542_v25  ;;  %200 = vst [vmem:[#allocation7 + $0x70] sm:$0xff] %v536_v23  ;;  %v220_v44 = vsub.f32 0.0, %v528_v14 }
  0x38   :  { %359 = vlog2.f32 %v238_v39  ;;  %201 = vst [vmem:[#allocation7 + $0x78] sm:$0xff] %v542_v25  ;;  %202 = vst [vmem:[#allocation7 + $0x80] sm:$0xff] %v550_v34  ;;  %v235_v45 = vsub.f32 0.0, %v536_v23  ;;  %vm248_vm1 = vcmp.gt.f32.partialorder %v528_v14, %v522_v12  ;;  %vm249_vm2 = vcmp.gt.f32.partialorder %v550_v34, %v542_v25 }
  0x39   :  { %153 = vst [vmem:[#allocation7 + $0x28] sm:$0xff] %v129_v40  ;;  %203 = vst [vmem:[#allocation7 + $0x88] sm:$0xff] %v557_v38  ;;  %v250_v48 = vsel %vm248_vm1, %v528_v14, %v522_v12  ;;  %v251_v49 = vsel %vm249_vm2, %v550_v34, %v542_v25  ;;  %v252_v51 = vsel %vm248_vm1, 1, %v462_v50 }
  0x3d   :  { %v350_v43 = vpop.eup %349 }
  0x3e   :  { %v352_v46 = vpop.eup %351  ;;  %v210_v47 = vmul.f32 0.6931472, %v350_v43 }
  0x3f   :  { %416 = shalt.err (!%p413_p6)
}
  0x40   :  { %s417_s14 = scalar_lea.hbm %s640_s2, 2304 }
  0x41   :  { %p418_p7 = scmp.ne.s32.totalorder %s640_s2, %s417_s14  ;;  %p421_p8 = scmp.lt.u32.totalorder %s417_s14, %s640_s2 }
  0x43   :  { %p423_p9 = pnand %p421_p8, %p418_p7 }
  0x45   :  { %426 = shalt.err (!%p423_p9)
}
  0x46   :  { %308 = dma.vmem_to_hbm [thread:$0]  %s560_s10, 2304, %s640_s2, [#allocation4], %s458_s22, %s458_s22, %s459_s23   ;;  %v225_v52 = vmul.f32 0.6931472, %v352_v46  ;;  %v253_v53 = vsel %vm249_vm2, 1, %v462_v50  ;;  %vm254_vm3 = vcmp.gt.f32.partialorder %v536_v23, %v250_v48  ;;  %vm255_vm4 = vcmp.gt.f32.partialorder %v557_v38, %v251_v49  ;;  %v354_v54 = vpop.eup %353 }
  0x47   :  { %v221_v55 = vsub.f32 0.0, %v550_v34  ;;  %v236_v56 = vsub.f32 0.0, %v557_v38  ;;  %v256_v57 = vsel %vm254_vm3, 2, %v252_v51  ;;  %v257_v58 = vsel %vm255_vm4, 2, %v253_v53  ;;  %v356_v59 = vpop.eup %355  ;;  %s464_s2 = smov [#allocation8]  }
  0x48   :  { %v213_v60 = vmul.f32 %v210_v47, %v205_v41  ;;  %v240_v61 = vmul.f32 0.6931472, %v354_v54  ;;  %vm258_vm5 = vcmp.eq.s32.totalorder %v256_v57, 0  ;;  %vm259_vm6 = vcmp.eq.s32.totalorder %v257_v58, 0  ;;  %v358_v62 = vpop.eup %357  ;;  %s314_s21 = sshll.u32 %s464_s2, 4  ;;  %s315_s21 = int_to_ptr.vmem [resolvable:$true] %s314_s21 }
  0x49   :  { %v212_v63 = vmul.f32 0.6931472, %v356_v59  ;;  %v228_v0 = vmul.f32 %v225_v52, %v220_v44  ;;  %vm260_vm7 = vmand %vm258_vm5, %vm109_vm0  ;;  %vm271_vm8 = vcmp.eq.s32.totalorder %v256_v57, 1  ;;  %vm272_vm9 = vcmp.eq.s32.totalorder %v257_v58, 1  ;;  %v360_v1 = vpop.eup %359  ;;  %s427_s24 = scalar_lea.vmem %s315_s21, 768  ;;  %p432_p11 = scmp.lt.s32.totalorder %s315_s21, %s315_s21 }
  0x4a   :  { %v227_v2 = vmul.f32 0.6931472, %v358_v62  ;;  %v243_v3 = vmul.f32 %v240_v61, %v235_v45  ;;  %vm261_vm10 = vmand %vm259_vm6, %vm109_vm0  ;;  %v463_v5 = vmov 0.0   ;;  %vm284_vm11 = vcmp.eq.s32.totalorder %v256_v57, 2  ;;  %p428_p10 = scmp.ne.s32.totalorder %s315_s21, %s427_s24  ;;  %p433_p12 = scmp.lt.s32.totalorder %s427_s24, %s427_s24 }
  0x4b   :  { %v335_v6 = vsel %vm260_vm7, 1.0, %v463_v5  ;;  %v214_v7 = vmul.f32 %v212_v63, %v206_v42  ;;  %v242_v8 = vmul.f32 0.6931472, %v360_v1  ;;  %v336_v9 = vsel %vm261_vm10, 1.0, %v463_v5  ;;  %vm273_vm12 = vmand %vm271_vm8, %vm109_vm0 }
  0x4c   :  { %vm285_vm13 = vcmp.eq.s32.totalorder %v257_v58, 2  ;;  %v229_v10 = vmul.f32 %v227_v2, %v221_v55  ;;  %v268_v11 = vadd.f32 %v336_v9, %v335_v6  ;;  %vm274_vm14 = vmand %vm272_vm9, %vm109_vm0  ;;  %v337_v12 = vsel %vm273_vm12, 1.0, %v463_v5  ;;  %p434_p13 = por %p433_p12, %p432_p11 }
  0x4d   :  { %v215_v13 = vadd.f32 %v214_v7, %v213_v60  ;;  %v244_v14 = vmul.f32 %v242_v8, %v236_v56  ;;  %v338_v15 = vsel %vm274_vm14, 1.0, %v463_v5  ;;  %vm286_vm15 = vmand %vm284_vm11, %vm109_vm0 }
  0x4e   :  { %v230_v16 = vadd.f32 %v229_v10, %v228_v0  ;;  %v281_v17 = vadd.f32 %v338_v15, %v337_v12  ;;  %vm287_vm1 = vmand %vm285_vm13, %vm109_vm0  ;;  %v339_v18 = vsel %vm286_vm15, 1.0, %v463_v5  ;;  %270 = vst [vmem:[#allocation8 + $0x18] sm:$0xff] %v268_v11  ;;  %p435_p0 = pnand %p434_p13, %p428_p10 }
  0x4f   :  { %v245_v19 = vadd.f32 %v244_v14, %v243_v3  ;;  %v340_v20 = vsel %vm287_vm1, 1.0, %v463_v5  ;;  %217 = vst [vmem:[#allocation8] sm:$0xff] %v215_v13 }
  0x50   :  { %v294_v21 = vadd.f32 %v340_v20, %v339_v18  ;;  %232 = vst [vmem:[#allocation8 + $0x8] sm:$0xff] %v230_v16  ;;  %283 = vst [vmem:[#allocation8 + $0x20] sm:$0xff] %v281_v17 }
  0x51   :  { %247 = vst [vmem:[#allocation8 + $0x10] sm:$0xff] %v245_v19 }
  0x52   :  { %296 = vst [vmem:[#allocation8 + $0x28] sm:$0xff] %v294_v21 }
  0x53   :  { %438 = shalt.err (!%p435_p0)
}
  0x54   :  { %s439_s27 = scalar_lea.hbm %s641_s3, 768 }
  0x55   :  { %p440_p1 = scmp.ne.s32.totalorder %s641_s3, %s439_s27  ;;  %p443_p2 = scmp.lt.u32.totalorder %s439_s27, %s641_s3 }
  0x57   :  { %p445_p3 = pnand %p443_p2, %p440_p1 }
  0x59   :  { %448 = shalt.err (!%p445_p3)
}
  0x5a   :  { %320 = dma.vmem_to_hbm [thread:$0]  %s315_s21, 768, %s641_s3, [#allocation9], %s458_s22, %s458_s22, %s459_s23  }
  0x5b   :  { %453 = dma.done.wait [#allocation4], 2304  }
  0x5c   :  { %454 = vsyncadd [#allocation4], 4294964992 }
  0x5d   :  { %455 = dma.done.wait [#allocation9], 768  }
  0x5e   :  { %456 = vsyncadd [#allocation9], 4294966528 }
  0x5f   :  { %327 = vsyncpa [#allocation3], 1 }
  0x60   :  { %328 = vsyncpa [#allocation6], 1 }
  0x61   :  { %329 = vsyncpa [#allocation4], 1 }
  0x62   :  { %330 = vsyncpa [#allocation9], 1 }

</bundles_post_ra>
